<compile_context>
chip_gen: v5e
topology: v5e:2x2
jax: 0.10.0
libtpu: 0.0.40
codegen_flags: <defaults>
</compile_context>

<pallas_src>
import functools

import jax
import jax.numpy as jnp
from jax.experimental import pallas as pl
from jax.experimental.pallas import tpu as pltpu

EPS = 1e-5
_VMEM_BUDGET = 24 * 1024 * 1024  # conservative: leaves headroom under v7x's 64 MiB


def _round_up(x, m):
    return (x + m - 1) // m * m


def _choose_tm(M, Cin, C4, tm, in_bytes):
    """Largest row tile (multiple of 8) whose double-buffered working set fits VMEM."""
    tm = max(8, min(_round_up(tm, 8), _round_up(M, 8)))
    while tm > 8:
        need = (2 * tm * Cin * in_bytes      # double-buffered x tile
                + 2 * tm * C4 * 4            # double-buffered output tile (f32)
                + Cin * C4 * in_bytes        # resident weights
                + 4 * C4 * 4)                # resident scale/shift/stat vectors
        if need <= _VMEM_BUDGET:
            break
        tm = _round_up(max(tm // 2, 8), 8)
        if tm == 8:
            break
    return tm


def _stats_kernel(x_ref, w_ref, s_ref, ss_ref):
    """Accumulate per-column sum / sum-of-squares of y = x @ w over row tiles."""
    @pl.when(pl.program_id(0) == 0)
    def _init():
        s_ref[...] = jnp.zeros_like(s_ref)
        ss_ref[...] = jnp.zeros_like(ss_ref)

    y = jnp.dot(x_ref[...], w_ref[...], preferred_element_type=jnp.float32)
    s_ref[...] += jnp.sum(y, axis=0, keepdims=True)
    ss_ref[...] += jnp.sum(y * y, axis=0, keepdims=True)


def _normalize_kernel(x_ref, w_ref, scale_ref, shift_ref, o_ref):
    """Recompute y = x @ w for this tile and apply the fused BN affine."""
    y = jnp.dot(x_ref[...], w_ref[...], preferred_element_type=jnp.float32)
    o_ref[...] = (y * scale_ref[...] + shift_ref[...]).astype(o_ref.dtype)


def unet_deconv_block(x_nchw, weight, bias, gamma, beta, *, tm=512,
                      compute_dtype=jnp.float32):
    """ConvTranspose2d(k=2, s=2) + BatchNorm2d (training-mode stats).

    weight: (Cin, Cout, 2, 2) as in PyTorch ConvTranspose2d.  Input/output NCHW.
    The ConvTranspose bias is mathematically cancelled by BatchNorm's batch-mean
    subtraction, so it is ignored (the result is identical to PyTorch).
    Set compute_dtype=jnp.bfloat16 for 2x MXU throughput / half the x DMA bytes
    (loosen numeric tolerances accordingly).
    """
    del bias  # exactly cancelled by training-mode BatchNorm
    N, Cin, H, W = x_nchw.shape
    Cout = weight.shape[1]
    C4 = 4 * Cout
    M = N * H * W

    # NCHW -> NHWC -> (M, Cin); weights (Cin,Cout,kh,kw) -> (Cin, 4*Cout) with
    # column layout col = (kh*2 + kw)*Cout + co.
    x_flat = jnp.transpose(x_nchw, (0, 2, 3, 1)).reshape(M, Cin).astype(compute_dtype)
    w_flat = jnp.transpose(weight, (0, 2, 3, 1)).reshape(Cin, C4).astype(compute_dtype)

    in_bytes = jnp.dtype(compute_dtype).itemsize
    tm = _choose_tm(M, Cin, C4, tm, in_bytes)
    Mp = _round_up(M, tm)
    if Mp != M:
        # Zero rows contribute nothing to the (bias-free) statistics.
        x_flat = jnp.pad(x_flat, ((0, Mp - M), (0, 0)))
    grid = (Mp // tm,)

    x_spec = pl.BlockSpec((tm, Cin), lambda i: (i, 0))
    w_spec = pl.BlockSpec((Cin, C4), lambda i: (0, 0))     # resident across the grid
    vec_spec = pl.BlockSpec((1, C4), lambda i: (0, 0))     # resident across the grid

    cp_stats = pltpu.CompilerParams(dimension_semantics=("arbitrary",),
                                    vmem_limit_bytes=32 * 1024 * 1024)
    cp_norm = pltpu.CompilerParams(dimension_semantics=("parallel",),
                                   vmem_limit_bytes=32 * 1024 * 1024)

    # Pass 1: per-column sums / sums-of-squares (y never written to HBM).
    s_cols, ss_cols = pl.pallas_call(
        _stats_kernel,
        grid=grid,
        in_specs=[x_spec, w_spec],
        out_specs=[vec_spec, vec_spec],
        out_shape=[jax.ShapeDtypeStruct((1, C4), jnp.float32),
                   jax.ShapeDtypeStruct((1, C4), jnp.float32)],
        compiler_params=cp_stats,
    )(x_flat, w_flat)

    # Tiny per-channel finalize (fold the 4 (kh,kw) blocks) in XLA.
    count = 4.0 * M                       # number of output pixels per channel
    s_c = jnp.sum(s_cols.reshape(4, Cout), axis=0)
    ss_c = jnp.sum(ss_cols.reshape(4, Cout), axis=0)
    mean = s_c / count
    var = jnp.maximum(ss_c / count - mean * mean, 0.0)   # biased var (BN training)
    invstd = jax.lax.rsqrt(var + EPS)
    scale = gamma.astype(jnp.float32) * invstd
    shift = beta.astype(jnp.float32) - mean * scale
    scale4 = jnp.tile(scale, 4)[None, :]
    shift4 = jnp.tile(shift, 4)[None, :]

    # Pass 2: recompute y per tile, apply fused affine BN, single HBM output write.
    out = pl.pallas_call(
        _normalize_kernel,
        grid=grid,
        in_specs=[x_spec, w_spec, vec_spec, vec_spec],
        out_specs=pl.BlockSpec((tm, C4), lambda i: (i, 0)),
        out_shape=jax.ShapeDtypeStruct((Mp, C4), jnp.float32),
        compiler_params=cp_norm,
    )(x_flat, w_flat, scale4, shift4)

    out = out[:M]
    # TODO(synk): fuse this pixel-shuffle into the output BlockSpec (emit an
    # (N*H, 2, W, 2*Cout) layout directly from the kernel) and accept/emit NHWC at
    # the op boundary to remove the remaining XLA transpose passes.
    out = out.reshape(N, H, W, 2, 2, Cout)
    out = out.transpose(0, 1, 3, 2, 4, 5).reshape(N, 2 * H, 2 * W, Cout)
    return jnp.transpose(out, (0, 3, 1, 2))


if __name__ == "__main__":
    key = jax.random.PRNGKey(0)
    N, Cin, Cout, H, W = 2, 4, 8, 16, 16
    k1, k2, k3, k4, k5 = jax.random.split(key, 5)

    x = jax.random.normal(k1, (N, Cin, H, W), jnp.float32)
    weight = 0.1 * jax.random.normal(k2, (Cin, Cout, 2, 2), jnp.float32)
    bias = 0.1 * jax.random.normal(k3, (Cout,), jnp.float32)
    gamma = 1.0 + 0.1 * jax.random.normal(k4, (Cout,), jnp.float32)
    beta = 0.1 * jax.random.normal(k5, (Cout,), jnp.float32)

    # Small tile so the test exercises multiple grid steps (M = 512 -> 4 tiles).
    fn = jax.jit(functools.partial(unet_deconv_block, tm=128))
    out = jax.block_until_ready(fn(x, weight, bias, gamma, beta))

    # Pure-JAX reference: ConvTranspose2d (k=2, s=2, WITH bias) + BatchNorm2d
    # training-mode normalization (biased batch variance).
    y = jnp.einsum('ncij,cokl->noikjl', x, weight).reshape(N, Cout, 2 * H, 2 * W)
    y = y + bias[None, :, None, None]
    mu = y.mean(axis=(0, 2, 3), keepdims=True)
    var = y.var(axis=(0, 2, 3), keepdims=True)
    ref = (y - mu) / jnp.sqrt(var + EPS)
    ref = ref * gamma[None, :, None, None] + beta[None, :, None, None]

    assert out.shape == ref.shape == (N, Cout, 2 * H, 2 * W)
    max_err = float(jnp.max(jnp.abs(out - ref)))
    assert jnp.allclose(out, ref, atol=1e-4, rtol=1e-4), f"max_err={max_err}"
    print("KERNEL_OK")
</pallas_src>

<mosaic_0001>
module attributes {stable_mosaic.version = 11 : i64} {
  func.func @_stats_kernel(%arg0: i32, %arg1: memref<128x4xf32, #tpu.memory_space<vmem>>, %arg2: memref<4x32xf32, #tpu.memory_space<vmem>>, %arg3: memref<1x32xf32, #tpu.memory_space<vmem>>, %arg4: memref<1x32xf32, #tpu.memory_space<vmem>>) attributes {dimension_semantics = [#tpu.dimension_semantics<arbitrary>], iteration_bounds = array<i64: 4>, scalar_prefetch = 0 : i64, scratch_operands = 0 : i64, tpu.core_type = #tpu.core_type<tc>, window_params = [{transform_indices = @transform_0, window_bounds = array<i64: 128, 4>}, {pipeline_mode = #tpu.pipeline_mode<synchronous>, transform_indices = @transform_1, window_bounds = array<i64: 4, 32>}, {pipeline_mode = #tpu.pipeline_mode<synchronous>, transform_indices = @transform_2, window_bounds = array<i64: 1, 32>}, {pipeline_mode = #tpu.pipeline_mode<synchronous>, transform_indices = @transform_3, window_bounds = array<i64: 1, 32>}]} {
    %c0_i32 = arith.constant 0 : i32
    %0 = arith.cmpi eq, %arg0, %c0_i32 : i32
    %1 = arith.extui %0 : i1 to i32
    %c0_i32_0 = arith.constant 0 : i32
    %2 = arith.cmpi ne, %1, %c0_i32_0 : i32
    scf.if %2 {
      %cst_14 = arith.constant 0.000000e+00 : f32
      %17 = vector.broadcast %cst_14 : f32 to vector<1x32xf32>
      %c0_15 = arith.constant 0 : index
      %c0_16 = arith.constant 0 : index
      %18 = vector.load %arg3[%c0_15, %c0_16] : memref<1x32xf32, #tpu.memory_space<vmem>>, vector<1x32xf32>
      tpu.vector_store %arg3[%c0_15, %c0_16], %17 {strides = array<i32>} : memref<1x32xf32, #tpu.memory_space<vmem>>, vector<1x32xf32>,
      %cst_17 = arith.constant 0.000000e+00 : f32
      %19 = vector.broadcast %cst_17 : f32 to vector<1x32xf32>
      %c0_18 = arith.constant 0 : index
      %c0_19 = arith.constant 0 : index
      %20 = vector.load %arg4[%c0_18, %c0_19] : memref<1x32xf32, #tpu.memory_space<vmem>>, vector<1x32xf32>
      tpu.vector_store %arg4[%c0_18, %c0_19], %19 {strides = array<i32>} : memref<1x32xf32, #tpu.memory_space<vmem>>, vector<1x32xf32>,
    } else {
    }
    %c0 = arith.constant 0 : index
    %c0_1 = arith.constant 0 : index
    %3 = vector.load %arg1[%c0, %c0_1] : memref<128x4xf32, #tpu.memory_space<vmem>>, vector<128x4xf32>
    %c0_2 = arith.constant 0 : index
    %c0_3 = arith.constant 0 : index
    %4 = vector.load %arg2[%c0_2, %c0_3] : memref<4x32xf32, #tpu.memory_space<vmem>>, vector<4x32xf32>
    %cst = arith.constant dense<0.000000e+00> : vector<128x32xf32>
    %5 = tpu.matmul %3, %4, %cst {dimension_numbers = #tpu.dot_dimension_numbers<[1], [0], [0], [1], [0, 0, 1, 1], [], []>} : vector<128x4xf32>, vector<4x32xf32>, vector<128x32xf32> -> vector<128x32xf32>
    %c0_4 = arith.constant 0 : index
    %c0_5 = arith.constant 0 : index
    %6 = vector.load %arg3[%c0_4, %c0_5] : memref<1x32xf32, #tpu.memory_space<vmem>>, vector<1x32xf32>
    %cst_6 = arith.constant dense<0.000000e+00> : vector<32xf32>
    %7 = vector.multi_reduction <add>, %5, %cst_6 [0] : vector<128x32xf32> to vector<32xf32>
    %8 = vector.shape_cast %7 : vector<32xf32> to vector<1x32xf32>
    %9 = arith.addf %6, %8 : vector<1x32xf32>
    %c0_7 = arith.constant 0 : index
    %c0_8 = arith.constant 0 : index
    %10 = vector.load %arg3[%c0_7, %c0_8] : memref<1x32xf32, #tpu.memory_space<vmem>>, vector<1x32xf32>
    tpu.vector_store %arg3[%c0_7, %c0_8], %9 {strides = array<i32>} : memref<1x32xf32, #tpu.memory_space<vmem>>, vector<1x32xf32>,
    %c0_9 = arith.constant 0 : index
    %c0_10 = arith.constant 0 : index
    %11 = vector.load %arg4[%c0_9, %c0_10] : memref<1x32xf32, #tpu.memory_space<vmem>>, vector<1x32xf32>
    %12 = arith.mulf %5, %5 : vector<128x32xf32>
    %cst_11 = arith.constant dense<0.000000e+00> : vector<32xf32>
    %13 = vector.multi_reduction <add>, %12, %cst_11 [0] : vector<128x32xf32> to vector<32xf32>
    %14 = vector.shape_cast %13 : vector<32xf32> to vector<1x32xf32>
    %15 = arith.addf %11, %14 : vector<1x32xf32>
    %c0_12 = arith.constant 0 : index
    %c0_13 = arith.constant 0 : index
    %16 = vector.load %arg4[%c0_12, %c0_13] : memref<1x32xf32, #tpu.memory_space<vmem>>, vector<1x32xf32>
    tpu.vector_store %arg4[%c0_12, %c0_13], %15 {strides = array<i32>} : memref<1x32xf32, #tpu.memory_space<vmem>>, vector<1x32xf32>,
    return
  }
  func.func @transform_0(%arg0: i32) -> (i32, i32) {
    %c0_i32 = arith.constant 0 : i32
    %c0_i32_0 = arith.constant 0 : i32
    return %arg0, %c0_i32 : i32, i32
  }
  func.func @transform_1(%arg0: i32) -> (i32, i32) {
    %c0_i32 = arith.constant 0 : i32
    %c0_i32_0 = arith.constant 0 : i32
    %c0_i32_1 = arith.constant 0 : i32
    return %c0_i32, %c0_i32_0 : i32, i32
  }
  func.func @transform_2(%arg0: i32) -> (i32, i32) {
    %c0_i32 = arith.constant 0 : i32
    %c0_i32_0 = arith.constant 0 : i32
    %c0_i32_1 = arith.constant 0 : i32
    return %c0_i32, %c0_i32_0 : i32, i32
  }
  func.func @transform_3(%arg0: i32) -> (i32, i32) {
    %c0_i32 = arith.constant 0 : i32
    %c0_i32_0 = arith.constant 0 : i32
    %c0_i32_1 = arith.constant 0 : i32
    return %c0_i32, %c0_i32_0 : i32, i32
  }
}

module attributes {stable_mosaic.version = 11 : i64} {
  func.func @_normalize_kernel(%arg0: i32, %arg1: memref<128x4xf32, #tpu.memory_space<vmem>>, %arg2: memref<4x32xf32, #tpu.memory_space<vmem>>, %arg3: memref<1x32xf32, #tpu.memory_space<vmem>>, %arg4: memref<1x32xf32, #tpu.memory_space<vmem>>, %arg5: memref<128x32xf32, #tpu.memory_space<vmem>>) attributes {dimension_semantics = [#tpu.dimension_semantics<parallel>], iteration_bounds = array<i64: 4>, scalar_prefetch = 0 : i64, scratch_operands = 0 : i64, tpu.core_type = #tpu.core_type<tc>, window_params = [{transform_indices = @transform_0, window_bounds = array<i64: 128, 4>}, {pipeline_mode = #tpu.pipeline_mode<synchronous>, transform_indices = @transform_1, window_bounds = array<i64: 4, 32>}, {pipeline_mode = #tpu.pipeline_mode<synchronous>, transform_indices = @transform_2, window_bounds = array<i64: 1, 32>}, {pipeline_mode = #tpu.pipeline_mode<synchronous>, transform_indices = @transform_3, window_bounds = array<i64: 1, 32>}, {transform_indices = @transform_4, window_bounds = array<i64: 128, 32>}]} {
    %c0 = arith.constant 0 : index
    %c0_0 = arith.constant 0 : index
    %0 = vector.load %arg1[%c0, %c0_0] : memref<128x4xf32, #tpu.memory_space<vmem>>, vector<128x4xf32>
    %c0_1 = arith.constant 0 : index
    %c0_2 = arith.constant 0 : index
    %1 = vector.load %arg2[%c0_1, %c0_2] : memref<4x32xf32, #tpu.memory_space<vmem>>, vector<4x32xf32>
    %cst = arith.constant dense<0.000000e+00> : vector<128x32xf32>
    %2 = tpu.matmul %0, %1, %cst {dimension_numbers = #tpu.dot_dimension_numbers<[1], [0], [0], [1], [0, 0, 1, 1], [], []>} : vector<128x4xf32>, vector<4x32xf32>, vector<128x32xf32> -> vector<128x32xf32>
    %c0_3 = arith.constant 0 : index
    %c0_4 = arith.constant 0 : index
    %3 = vector.load %arg3[%c0_3, %c0_4] : memref<1x32xf32, #tpu.memory_space<vmem>>, vector<1x32xf32>
    %4 = vector.broadcast %3 : vector<1x32xf32> to vector<128x32xf32>
    %5 = arith.mulf %2, %4 : vector<128x32xf32>
    %c0_5 = arith.constant 0 : index
    %c0_6 = arith.constant 0 : index
    %6 = vector.load %arg4[%c0_5, %c0_6] : memref<1x32xf32, #tpu.memory_space<vmem>>, vector<1x32xf32>
    %7 = vector.broadcast %6 : vector<1x32xf32> to vector<128x32xf32>
    %8 = arith.addf %5, %7 : vector<128x32xf32>
    %c0_7 = arith.constant 0 : index
    %c0_8 = arith.constant 0 : index
    %9 = vector.load %arg5[%c0_7, %c0_8] : memref<128x32xf32, #tpu.memory_space<vmem>>, vector<128x32xf32>
    tpu.vector_store %arg5[%c0_7, %c0_8], %8 {strides = array<i32>} : memref<128x32xf32, #tpu.memory_space<vmem>>, vector<128x32xf32>,
    return
  }
  func.func @transform_0(%arg0: i32) -> (i32, i32) {
    %c0_i32 = arith.constant 0 : i32
    %c0_i32_0 = arith.constant 0 : i32
    return %arg0, %c0_i32 : i32, i32
  }
  func.func @transform_1(%arg0: i32) -> (i32, i32) {
    %c0_i32 = arith.constant 0 : i32
    %c0_i32_0 = arith.constant 0 : i32
    %c0_i32_1 = arith.constant 0 : i32
    return %c0_i32, %c0_i32_0 : i32, i32
  }
  func.func @transform_2(%arg0: i32) -> (i32, i32) {
    %c0_i32 = arith.constant 0 : i32
    %c0_i32_0 = arith.constant 0 : i32
    %c0_i32_1 = arith.constant 0 : i32
    return %c0_i32, %c0_i32_0 : i32, i32
  }
  func.func @transform_3(%arg0: i32) -> (i32, i32) {
    %c0_i32 = arith.constant 0 : i32
    %c0_i32_0 = arith.constant 0 : i32
    %c0_i32_1 = arith.constant 0 : i32
    return %c0_i32, %c0_i32_0 : i32, i32
  }
  func.func @transform_4(%arg0: i32) -> (i32, i32) {
    %c0_i32 = arith.constant 0 : i32
    %c0_i32_0 = arith.constant 0 : i32
    return %arg0, %c0_i32 : i32, i32
  }
}

</mosaic_0001>

<bundles_post_ra>
// kernel: tile.18
= control target key start
LH: loop header
LB: loop body
LE: loop exit
PB: predicated region body
PF: predicated region fallthrough
CT: control target
= control target key end

     0   :  { %s22_s0 = inlined_call_operand.vmem [shape: f32[8], index: 0, kind: input, shape index: {}]   ;;  %s23_s1 = inlined_call_operand.vmem [shape: f32[4,8], index: 1, kind: output, shape index: {}]  }
   0x1   :  { %v4_v0 = vld [vmem:[%s22_s0] ss:$0 sm:$0xff] }
   0x2   :  { %5 = vst [vmem:[%s23_s1] sm:$0xf] %v4_v0 }

// kernel: tile.19
= control target key start
LH: loop header
LB: loop body
LE: loop exit
PB: predicated region body
PF: predicated region fallthrough
CT: control target
= control target key end

     0   :  { %s37_s8 = smov 8   ;;  %s38_s9 = smov 16   ;;  %vm7_vm0 = vcmask 64512   ;;  %vm13_vm1 = vcmask 261312   ;;  %vm19_vm2 = vcmask 195712   ;;  %vm25_vm3 = vcmask 130112   ;;  %s55_s0 = inlined_call_operand.vmem [shape: f32[4,8], index: 0, kind: input, shape index: {}]   ;;  %s56_s1 = inlined_call_operand.vmem [shape: f32[1,32], index: 1, kind: output, shape index: {}]  }
   0x1   :  { %v4_v0 = vld [vmem:[%s55_s0] sm:$0xf]  ;;  %s36_s0 = smov 24  }
   0x2   :  { %5 = vst [vmem:[#allocation1] sm:$0xf] %v4_v0 }
   0x9   :  { %v10_v1 = vld [vmem:[#allocation1 + $0x3] sm:$0x1]   ;;  %v22_v2 = vld [vmem:[#allocation1 + $0x1] sm:$0x1]   ;;  %v16_v3 = vld [vmem:[#allocation1 + $0x2] sm:$0x1]  }
   0xa   :  { %11 = vrot.lane.b32.xlu0 %v10_v1, %s36_s0  ;;  %23 = vrot.lane.b32.xlu1 %v22_v2, %s37_s8  ;;  %v6_v4 = vld [vmem:[#allocation1] sm:$0x1]  }
   0xb   :  { %8 = vst.msk [vmem:[#allocation0] sm:$0x1] %vm7_vm0, %v6_v4  }
  0x12   :  { %17 = vrot.lane.b32.xlu0 %v16_v3, %s38_s9 }
  0x7c   :  { %v12_v5 = vpop.permute.xlu0 %11   ;;  %v24_v6 = vpop.permute.xlu1 %23  }
  0x7d   :  { %14 = vst.msk [vmem:[#allocation0] sm:$0x1] %vm13_vm1, %v12_v5  }
  0x84   :  { %v18_v7 = vpop.permute.xlu0 %17  }
  0x85   :  { %20 = vst.msk [vmem:[#allocation0] sm:$0x1] %vm19_vm2, %v18_v7  }
  0x86   :  { %26 = vst.msk [vmem:[#allocation0] sm:$0x1] %vm25_vm3, %v24_v6  }
  0x8d   :  { %v29_v8 = vld [vmem:[#allocation0] sm:$0x1] }
  0x8e   :  { %32 = vst [vmem:[%s56_s1] sm:$0x1] %v29_v8 }

// kernel: unet_deconv_block.2
= control target key start
LH: loop header
LB: loop body
LE: loop exit
PB: predicated region body
PF: predicated region fallthrough
CT: control target
= control target key end

     0   :  { %s497_s12 = smov 0   ;;  %s603_s0 = inlined_call_operand.vmem [shape: f32[512,4], index: 0, kind: input, shape index: {}]   ;;  %s604_s1 = inlined_call_operand.vmem [shape: f32[4,32], index: 1, kind: input, shape index: {}]   ;;  %s605_s2 = inlined_call_operand.vmem [shape: f32[1,32], index: 2, kind: output, shape index: {0}]   ;;  %s606_s3 = inlined_call_operand.vmem [shape: f32[1,32], index: 3, kind: output, shape index: {1}]  }
   0x1 LB: > { %s430_s13 = sadd.s32 4294967295, %s474_s12   ;;  %p433_p0 = scmp.ge.s32.totalorder %s474_s12, 1  ;;  %s474_s12 = sphi %s497_s12, %s14_s12  }
   0x2   : > { %p131_p1 = scmp.lt.s32.totalorder %s474_s12, 5 }
   0x4   : > { %p132_p2 = pnand %p433_p0, %p131_p1 }
   0x5   : > { %s434_s14 = sshll.u32 (!%p132_p2), %s430_s13, 4  ;;  %p436_p4 = scmp.ne.s32.totalorder (!%p132_p2), %s430_s13, 0 }
   0x6   : > { %135 = sbr.rel (%p132_p2) target bundleno = 215 (0xd7), region = 28  ;;  %p151_p3 = scmp.lt.s32.totalorder (!%p132_p2), %s434_s14, 63 }
   0xb   : > { %s608_s14 = smov (!%p151_p3, %s434_s14), 63  ;;  %159 = sbr.rel (%p436_p4) target bundleno = 19 (0x13), region = 32 }
   0xc   : > { %s435_s15 = sshll.u32 %s608_s14, 3 }
   0xd   : > { %s508_s18 = scalar_lea.vmem %s603_s0, %s435_s15 }
  0x10   : > { %vm160_vm0 = vcmask 253952   ;;  %v476_v0 = vmov 0.0  }
  0x11   : > { %161 = vst.msk [vmem:[%s605_s2] sm:$0x1] %vm160_vm0, %v476_v0 }
  0x12   : > { %162 = vst.msk [vmem:[%s606_s3] sm:$0x1] %vm160_vm0, %v476_v0 }
  0x13 PF: > { %v179_v1 = vld [vmem:[%s604_s1] sm:$0xf]  ;;  %vm229_vm1 = vcmask 1043456   ;;  %vm180_vm2 = vcmask 31744   ;;  %v164_v6 = vld [vmem:[%s508_s18 + $0x8] sm:$0xff]  ;;  %v165_v10 = vld [vmem:[%s508_s18 + $0x10] sm:$0xff] }
  0x14   : > { %v163_v2 = vld [vmem:[%s508_s18] sm:$0xff]  ;;  %437 = vmatpush.msk.msra.mxu0 %vm229_vm1, %v179_v1  ;;  %456 = vmatpush.msk.msra.mxu1 %vm229_vm1, %v179_v1  ;;  %v168_v7 = vld [vmem:[%s508_s18 + $0x28] sm:$0xff]  ;;  %v169_v11 = vld [vmem:[%s508_s18 + $0x30] sm:$0xff]  ;;  %vm299_vm3 = vcmask 261120   ;;  %vm338_vm4 = vcmask 253952  }
  0x15   : > { %v167_v3 = vld [vmem:[%s508_s18 + $0x20] sm:$0xff]  ;;  %438 = vmatmul.msk.f32.vlgmr.msra.gmra.mxu0 %vm180_vm2, %v163_v2  ;;  %457 = vmatpush.msk.msra.mxu2 %vm229_vm1, %v179_v1  ;;  %v172_v8 = vld [vmem:[%s508_s18 + $0x48] sm:$0xff]  ;;  %v173_v12 = vld [vmem:[%s508_s18 + $0x50] sm:$0xff] }
  0x16   : > { %v171_v4 = vld [vmem:[%s508_s18 + $0x40] sm:$0xff]  ;;  %442 = vmatmul.msk.f32.vlgmr.msra.gmra.mxu1 %vm180_vm2, %v167_v3  ;;  %458 = vmatpush.msk.msra.mxu3 %vm229_vm1, %v179_v1  ;;  %v176_v9 = vld [vmem:[%s508_s18 + $0x68] sm:$0xff]  ;;  %v177_v13 = vld [vmem:[%s508_s18 + $0x70] sm:$0xff] }
  0x17   : > { %v175_v5 = vld [vmem:[%s508_s18 + $0x60] sm:$0xff]  ;;  %446 = vmatmul.msk.f32.vlgmr.msra.gmra.mxu2 %vm180_vm2, %v171_v4  ;;  %v166_v14 = vld [vmem:[%s508_s18 + $0x18] sm:$0xff] }
  0x18   : > { %450 = vmatmul.msk.f32.vlgmr.msra.gmra.mxu3 %vm180_vm2, %v175_v5  ;;  %v170_v15 = vld [vmem:[%s508_s18 + $0x38] sm:$0xff] }
  0x19   : > { %v174_v16 = vld [vmem:[%s508_s18 + $0x58] sm:$0xff] }
  0x1a   : > { %v178_v17 = vld [vmem:[%s508_s18 + $0x78] sm:$0xff] }
  0x1d   : > { %439 = vmatmul.msk.f32.gmra.mxu0 %vm180_vm2, %v164_v6 }
  0x1e   : > { %443 = vmatmul.msk.f32.gmra.mxu1 %vm180_vm2, %v168_v7 }
  0x1f   : > { %447 = vmatmul.msk.f32.gmra.mxu2 %vm180_vm2, %v172_v8 }
  0x20   : > { %451 = vmatmul.msk.f32.gmra.mxu3 %vm180_vm2, %v176_v9 }
  0x25   : > { %440 = vmatmul.msk.f32.gmra.mxu0 %vm180_vm2, %v165_v10 }
  0x26   : > { %444 = vmatmul.msk.f32.gmra.mxu1 %vm180_vm2, %v169_v11 }
  0x27   : > { %448 = vmatmul.msk.f32.gmra.mxu2 %vm180_vm2, %v173_v12 }
  0x28   : > { %452 = vmatmul.msk.f32.gmra.mxu3 %vm180_vm2, %v177_v13 }
  0x2d   : > { %441 = vmatmul.msk.f32.gmra.mxu0 %vm180_vm2, %v166_v14 }
  0x2e   : > { %445 = vmatmul.msk.f32.gmra.mxu1 %vm180_vm2, %v170_v15 }
  0x2f   : > { %449 = vmatmul.msk.f32.gmra.mxu2 %vm180_vm2, %v174_v16 }
  0x30   : > { %453 = vmatmul.msk.f32.gmra.mxu3 %vm180_vm2, %v178_v17 }
  0x92   : > { %v250_v18 = vpop.f32.mrf.mxu0 }
  0x93   : > { %v262_v19 = vpop.f32.mrf.mxu1  ;;  %v341_v28 = vmul.f32 %v250_v18, %v250_v18  ;;  %v300_v31 = vsel %vm299_vm3, %v250_v18, 0.0 }
  0x94   : > { %v345_v41 = vmul.f32 %v262_v19, %v262_v19  ;;  %v307_v48 = vsel %vm299_vm3, %v262_v19, 0.0 }
  0x95   : > { %v357_v36 = vsel %vm299_vm3, %v341_v28, 0.0 }
  0x96   : > { %v364_v53 = vsel %vm299_vm3, %v345_v41, 0.0 }
  0x9a   : > { %v253_v20 = vpop.f32.mrf.mxu0  ;;  %v274_v22 = vpop.f32.mrf.mxu2 }
  0x9b   : > { %v265_v21 = vpop.f32.mrf.mxu1  ;;  %v551_v23 = vpop.f32.mrf.mxu3  ;;  %v342_v26 = vmul.f32 %v253_v20, %v253_v20  ;;  %v301_v29 = vsel %vm299_vm3, %v253_v20, 0.0  ;;  %v349_v1 = vmul.f32 %v274_v22, %v274_v22  ;;  %v315_v7 = vsel %vm299_vm3, %v274_v22, 0.0 }
  0x9c   : > { %v302_v34 = vadd.f32 %v301_v29, %v300_v31  ;;  %v346_v49 = vmul.f32 %v265_v21, %v265_v21  ;;  %v309_v54 = vsel %vm299_vm3, %v265_v21, 0.0  ;;  %v353_v22 = vmul.f32 %v551_v23, %v551_v23 }
  0x9d   : > { %v358_v32 = vsel %vm299_vm3, %v342_v26, 0.0  ;;  %v372_v11 = vsel %vm299_vm3, %v349_v1, 0.0  ;;  %v323_v29 = vsel %vm299_vm3, %v551_v23, 0.0 }
  0x9e   : > { %v359_v38 = vadd.f32 %v358_v32, %v357_v36  ;;  %v366_v59 = vsel %vm299_vm3, %v346_v49, 0.0 }
  0xa2   : > { %v256_v24 = vpop.f32.mrf.mxu0  ;;  %v277_v27 = vpop.f32.mrf.mxu2 }
  0xa3   : > { %v268_v25 = vpop.f32.mrf.mxu1  ;;  %v343_v30 = vmul.f32 %v256_v24, %v256_v24  ;;  %v303_v33 = vsel %vm299_vm3, %v256_v24, 0.0  ;;  %v289_v35 = vpop.f32.mrf.mxu3  ;;  %v350_v8 = vmul.f32 %v277_v27, %v277_v27  ;;  %v317_v12 = vsel %vm299_vm3, %v277_v27, 0.0 }
  0xa4   : > { %v304_v39 = vadd.f32 %v303_v33, %v302_v34  ;;  %v347_v55 = vmul.f32 %v268_v25, %v268_v25  ;;  %v311_v60 = vsel %vm299_vm3, %v268_v25, 0.0  ;;  %v380_v33 = vsel %vm299_vm3, %v353_v22, 0.0 }
  0xa5   : > { %v360_v37 = vsel %vm299_vm3, %v343_v30, 0.0  ;;  %v374_v17 = vsel %vm299_vm3, %v350_v8, 0.0  ;;  %v354_v30 = vmul.f32 %v289_v35, %v289_v35  ;;  %v325_v34 = vsel %vm299_vm3, %v289_v35, 0.0 }
  0xa6   : > { %v361_v45 = vadd.f32 %v360_v37, %v359_v38  ;;  %v368_v2 = vsel %vm299_vm3, %v347_v55, 0.0 }
  0xaa   : > { %v259_v40 = vpop.f32.mrf.mxu0  ;;  %v280_v44 = vpop.f32.mrf.mxu2 }
  0xab   : > { %v305_v42 = vsel %vm299_vm3, %v259_v40, 0.0  ;;  %v344_v43 = vmul.f32 %v259_v40, %v259_v40  ;;  %v271_v47 = vpop.f32.mrf.mxu1  ;;  %v292_v0 = vpop.f32.mrf.mxu3  ;;  %v351_v13 = vmul.f32 %v280_v44, %v280_v44  ;;  %v319_v18 = vsel %vm299_vm3, %v280_v44, 0.0 }
  0xac   : > { %v306_v46 = vadd.f32 %v305_v42, %v304_v39  ;;  %v348_v56 = vmul.f32 %v271_v47, %v271_v47  ;;  %v313_v61 = vsel %vm299_vm3, %v271_v47, 0.0  ;;  %v355_v36 = vmul.f32 %v292_v0, %v292_v0 }
  0xad   : > { %v362_v50 = vsel %vm299_vm3, %v344_v43, 0.0  ;;  %v376_v24 = vsel %vm299_vm3, %v351_v13, 0.0  ;;  %v382_v40 = vsel %vm299_vm3, %v354_v30, 0.0  ;;  %v327_v41 = vsel %vm299_vm3, %v292_v0, 0.0 }
  0xae   : > { %v308_v51 = vadd.f32 %v307_v48, %v306_v46  ;;  %v363_v52 = vadd.f32 %v362_v50, %v361_v45  ;;  %v370_v3 = vsel %vm299_vm3, %v348_v56, 0.0  ;;  %v384_v23 = vsel %vm299_vm3, %v355_v36, 0.0 }
  0xb0   : > { %v365_v57 = vadd.f32 %v364_v53, %v363_v52  ;;  %v310_v58 = vadd.f32 %v309_v54, %v308_v51 }
  0xb2   : > { %v312_v62 = vadd.f32 %v311_v60, %v310_v58  ;;  %v367_v63 = vadd.f32 %v366_v59, %v365_v57  ;;  %v283_v6 = vpop.f32.mrf.mxu2  ;;  %v298_v57 = vld [vmem:[%s605_s2] sm:$0x1] }
  0xb3   : > { %v352_v14 = vmul.f32 %v283_v6, %v283_v6  ;;  %v321_v19 = vsel %vm299_vm3, %v283_v6, 0.0  ;;  %v295_v28 = vpop.f32.mrf.mxu3  ;;  %v340_v60 = vld [vmem:[%s606_s3] sm:$0x1] }
  0xb4   : > { %v369_v4 = vadd.f32 %v368_v2, %v367_v63  ;;  %v314_v5 = vadd.f32 %v313_v61, %v312_v62  ;;  %v356_v37 = vmul.f32 %v295_v28, %v295_v28  ;;  %v329_v42 = vsel %vm299_vm3, %v295_v28, 0.0 }
  0xb5   : > { %v378_v25 = vsel %vm299_vm3, %v352_v14, 0.0 }
  0xb6   : > { %v316_v9 = vadd.f32 %v315_v7, %v314_v5  ;;  %v371_v10 = vadd.f32 %v370_v3, %v369_v4  ;;  %v386_v45 = vsel %vm299_vm3, %v356_v37, 0.0 }
  0xb8   : > { %v373_v15 = vadd.f32 %v372_v11, %v371_v10  ;;  %v318_v16 = vadd.f32 %v317_v12, %v316_v9 }
  0xba   : > { %v320_v20 = vadd.f32 %v319_v18, %v318_v16  ;;  %v375_v21 = vadd.f32 %v374_v17, %v373_v15 }
  0xbc   : > { %v377_v26 = vadd.f32 %v376_v24, %v375_v21  ;;  %v322_v27 = vadd.f32 %v321_v19, %v320_v20 }
  0xbe   : > { %v324_v31 = vadd.f32 %v323_v29, %v322_v27  ;;  %v379_v32 = vadd.f32 %v378_v25, %v377_v26 }
  0xc0   : > { %v381_v38 = vadd.f32 %v380_v33, %v379_v32  ;;  %v326_v39 = vadd.f32 %v325_v34, %v324_v31 }
  0xc2   : > { %v328_v43 = vadd.f32 %v327_v41, %v326_v39  ;;  %v383_v44 = vadd.f32 %v382_v40, %v381_v38 }
  0xc4   : > { %v385_v46 = vadd.f32 %v384_v23, %v383_v44  ;;  %v330_v47 = vadd.f32 %v329_v42, %v328_v43 }
  0xc6   : > { %v331_v48 = vrot.slane %v330_v47, 4  ;;  %v387_v35 = vadd.f32 %v386_v45, %v385_v46 }
  0xc8   : > { %v332_v49 = vadd.f32 %v331_v48, %v330_v47  ;;  %v388_v50 = vrot.slane %v387_v35, 4 }
  0xca   : > { %v333_v51 = vrot.slane %v332_v49, 2  ;;  %v389_v52 = vadd.f32 %v388_v50, %v387_v35 }
  0xcc   : > { %v334_v53 = vadd.f32 %v333_v51, %v332_v49  ;;  %v390_v54 = vrot.slane %v389_v52, 2 }
  0xce   : > { %v335_v55 = vrot.slane %v334_v53, 1  ;;  %v391_v56 = vadd.f32 %v390_v54, %v389_v52 }
  0xd0   : > { %v336_v58 = vadd.f32 %v335_v55, %v334_v53  ;;  %v392_v59 = vrot.slane %v391_v56, 1 }
  0xd2   : > { %v337_v61 = vadd.f32 %v336_v58, %v298_v57  ;;  %v393_v62 = vadd.f32 %v392_v59, %v391_v56 }
  0xd4   : > { %339 = vst.msk [vmem:[%s605_s2] sm:$0x1] %vm338_vm4, %v337_v61  ;;  %v394_v63 = vadd.f32 %v393_v62, %v340_v60 }
  0xd6   : > { %395 = vst.msk [vmem:[%s606_s3] sm:$0x1] %vm338_vm4, %v394_v63 }
  0xd7 PF: > { %s14_s12 = sadd.s32 1, %s474_s12  }
  0xd8   : > { %p11_p5 = scmp.ge.s32.totalorder %s14_s12, 6  }
  0xda   :  { %13 = sbr.rel (!%p11_p5) target bundleno = 1 (0x1), region = 66 }

// kernel: unet_deconv_block.3
= control target key start
LH: loop header
LB: loop body
LE: loop exit
PB: predicated region body
PF: predicated region fallthrough
CT: control target
= control target key end

     0   :  { %s523_s15 = smov 0   ;;  %s642_s0 = inlined_call_operand.vmem [shape: f32[512,4], index: 0, kind: input, shape index: {}]   ;;  %s643_s1 = inlined_call_operand.vmem [shape: f32[4,32], index: 1, kind: input, shape index: {}]   ;;  %s644_s2 = inlined_call_operand.vmem [shape: f32[1,32], index: 2, kind: input, shape index: {}]   ;;  %s645_s3 = inlined_call_operand.vmem [shape: f32[1,32], index: 3, kind: input, shape index: {}]   ;;  %s646_s4 = inlined_call_operand.vmem [shape: f32[512,32], index: 4, kind: output, shape index: {}]  }
   0x1 LB: > { %s449_s16 = sadd.s32 4294967295, %s496_s15   ;;  %p453_p0 = scmp.ge.s32.totalorder %s496_s15, 1  ;;  %s496_s15 = sphi %s523_s15, %s14_s15  }
   0x2   : > { %p163_p1 = scmp.lt.s32.totalorder %s496_s15, 5 }
   0x4   : > { %p164_p2 = pnand %p453_p0, %p163_p1 }
   0x5   : > { %s454_s19 = sshll.u32 (!%p164_p2), %s449_s16, 4 }
   0x6   : > { %167 = sbr.rel (%p164_p2) target bundleno = 177 (0xb1), region = 36  ;;  %p190_p3 = scmp.lt.s32.totalorder (!%p164_p2), %s454_s19, 63 }
   0xb   : > { %v217_v0 = vld [vmem:[%s643_s1] sm:$0xf]  ;;  %vm267_vm0 = vcmask 1043456   ;;  %s648_s19 = smov (!%p190_p3, %s454_s19), 63  ;;  %vm218_vm1 = vcmask 31744   ;;  %vm376_vm2 = vcmask 261120  }
   0xc   : > { %478 = vmatpush.msk.msra.mxu2 %vm267_vm0, %v217_v0  ;;  %479 = vmatpush.msk.msra.mxu3 %vm267_vm0, %v217_v0  ;;  %s455_s20 = sshll.u32 %s648_s19, 3  ;;  %v561_v17 = vld [vmem:[%s644_s2] ss:$0 sm:$0xff] }
   0xd   : > { %458 = vmatpush.msk.msra.mxu0 %vm267_vm0, %v217_v0  ;;  %477 = vmatpush.msk.msra.mxu1 %vm267_vm0, %v217_v0  ;;  %s193_s23 = scalar_lea.vmem %s642_s0, %s455_s20  ;;  %v566_v18 = vld [vmem:[%s645_s3] ss:$0 sm:$0xff]  ;;  %s575_s30 = scalar_lea.vmem %s646_s4, %s455_s20 }
   0xe   : > { %v209_v1 = vld [vmem:[%s193_s23 + $0x40] sm:$0xff]  ;;  %v210_v5 = vld [vmem:[%s193_s23 + $0x48] sm:$0xff]  ;;  %v211_v9 = vld [vmem:[%s193_s23 + $0x50] sm:$0xff] }
   0xf   : > { %v213_v2 = vld [vmem:[%s193_s23 + $0x60] sm:$0xff]  ;;  %467 = vmatmul.msk.f32.vlgmr.msra.gmra.mxu2 %vm218_vm1, %v209_v1  ;;  %v214_v6 = vld [vmem:[%s193_s23 + $0x68] sm:$0xff]  ;;  %v215_v10 = vld [vmem:[%s193_s23 + $0x70] sm:$0xff] }
  0x10   : > { %v201_v3 = vld [vmem:[%s193_s23] sm:$0xff]  ;;  %471 = vmatmul.msk.f32.vlgmr.msra.gmra.mxu3 %vm218_vm1, %v213_v2  ;;  %v202_v7 = vld [vmem:[%s193_s23 + $0x8] sm:$0xff]  ;;  %v203_v11 = vld [vmem:[%s193_s23 + $0x10] sm:$0xff] }
  0x11   : > { %v205_v4 = vld [vmem:[%s193_s23 + $0x20] sm:$0xff]  ;;  %459 = vmatmul.msk.f32.vlgmr.msra.gmra.mxu0 %vm218_vm1, %v201_v3  ;;  %v206_v8 = vld [vmem:[%s193_s23 + $0x28] sm:$0xff]  ;;  %v207_v12 = vld [vmem:[%s193_s23 + $0x30] sm:$0xff] }
  0x12   : > { %463 = vmatmul.msk.f32.vlgmr.msra.gmra.mxu1 %vm218_vm1, %v205_v4  ;;  %v212_v13 = vld [vmem:[%s193_s23 + $0x58] sm:$0xff] }
  0x13   : > { %v216_v14 = vld [vmem:[%s193_s23 + $0x78] sm:$0xff] }
  0x14   : > { %v204_v15 = vld [vmem:[%s193_s23 + $0x18] sm:$0xff] }
  0x15   : > { %v208_v16 = vld [vmem:[%s193_s23 + $0x38] sm:$0xff] }
  0x17   : > { %468 = vmatmul.msk.f32.gmra.mxu2 %vm218_vm1, %v210_v5 }
  0x18   : > { %472 = vmatmul.msk.f32.gmra.mxu3 %vm218_vm1, %v214_v6 }
  0x19   : > { %460 = vmatmul.msk.f32.gmra.mxu0 %vm218_vm1, %v202_v7 }
  0x1a   : > { %464 = vmatmul.msk.f32.gmra.mxu1 %vm218_vm1, %v206_v8 }
  0x1f   : > { %469 = vmatmul.msk.f32.gmra.mxu2 %vm218_vm1, %v211_v9 }
  0x20   : > { %473 = vmatmul.msk.f32.gmra.mxu3 %vm218_vm1, %v215_v10 }
  0x21   : > { %461 = vmatmul.msk.f32.gmra.mxu0 %vm218_vm1, %v203_v11 }
  0x22   : > { %465 = vmatmul.msk.f32.gmra.mxu1 %vm218_vm1, %v207_v12 }
  0x27   : > { %470 = vmatmul.msk.f32.gmra.mxu2 %vm218_vm1, %v212_v13 }
  0x28   : > { %474 = vmatmul.msk.f32.gmra.mxu3 %vm218_vm1, %v216_v14 }
  0x29   : > { %462 = vmatmul.msk.f32.gmra.mxu0 %vm218_vm1, %v204_v15 }
  0x2a   : > { %466 = vmatmul.msk.f32.gmra.mxu1 %vm218_vm1, %v208_v16 }
  0x8e   : > { %v288_v19 = vpop.f32.mrf.mxu0 }
  0x8f   : > { %v300_v20 = vpop.f32.mrf.mxu1  ;;  %v340_v21 = vmul.f32 %v561_v17, %v288_v19 }
  0x90   : > { %v344_v22 = vmul.f32 %v561_v17, %v300_v20 }
  0x91   : > { %v360_v23 = vadd.f32 %v566_v18, %v340_v21 }
  0x92   : > { %v364_v24 = vadd.f32 %v566_v18, %v344_v22  ;;  %v312_v25 = vpop.f32.mrf.mxu2 }
  0x93   : > { %377 = vst.msk [vmem:[%s575_s30] sm:$0xff] %vm376_vm2, %v360_v23  ;;  %v324_v26 = vpop.f32.mrf.mxu3  ;;  %v348_v27 = vmul.f32 %v561_v17, %v312_v25 }
  0x94   : > { %381 = vst.msk [vmem:[%s575_s30 + $0x20] sm:$0xff] %vm376_vm2, %v364_v24  ;;  %v352_v28 = vmul.f32 %v561_v17, %v324_v26 }
  0x95   : > { %v368_v29 = vadd.f32 %v566_v18, %v348_v27 }
  0x96   : > { %v372_v30 = vadd.f32 %v566_v18, %v352_v28  ;;  %v291_v31 = vpop.f32.mrf.mxu0 }
  0x97   : > { %v303_v32 = vpop.f32.mrf.mxu1  ;;  %v341_v33 = vmul.f32 %v561_v17, %v291_v31  ;;  %385 = vst.msk [vmem:[%s575_s30 + $0x40] sm:$0xff] %vm376_vm2, %v368_v29 }
  0x98   : > { %v345_v34 = vmul.f32 %v561_v17, %v303_v32  ;;  %389 = vst.msk [vmem:[%s575_s30 + $0x60] sm:$0xff] %vm376_vm2, %v372_v30 }
  0x99   : > { %v361_v35 = vadd.f32 %v566_v18, %v341_v33 }
  0x9a   : > { %v365_v36 = vadd.f32 %v566_v18, %v345_v34  ;;  %v315_v37 = vpop.f32.mrf.mxu2 }
  0x9b   : > { %378 = vst.msk [vmem:[%s575_s30 + $0x8] sm:$0xff] %vm376_vm2, %v361_v35  ;;  %v327_v38 = vpop.f32.mrf.mxu3  ;;  %v349_v39 = vmul.f32 %v561_v17, %v315_v37 }
  0x9c   : > { %382 = vst.msk [vmem:[%s575_s30 + $0x28] sm:$0xff] %vm376_vm2, %v365_v36  ;;  %v353_v40 = vmul.f32 %v561_v17, %v327_v38 }
  0x9d   : > { %v369_v41 = vadd.f32 %v566_v18, %v349_v39 }
  0x9e   : > { %v373_v42 = vadd.f32 %v566_v18, %v353_v40  ;;  %v294_v43 = vpop.f32.mrf.mxu0 }
  0x9f   : > { %v306_v44 = vpop.f32.mrf.mxu1  ;;  %v342_v45 = vmul.f32 %v561_v17, %v294_v43  ;;  %386 = vst.msk [vmem:[%s575_s30 + $0x48] sm:$0xff] %vm376_vm2, %v369_v41 }
  0xa0   : > { %v346_v46 = vmul.f32 %v561_v17, %v306_v44  ;;  %390 = vst.msk [vmem:[%s575_s30 + $0x68] sm:$0xff] %vm376_vm2, %v373_v42 }
  0xa1   : > { %v362_v47 = vadd.f32 %v566_v18, %v342_v45 }
  0xa2   : > { %v366_v48 = vadd.f32 %v566_v18, %v346_v46  ;;  %v318_v49 = vpop.f32.mrf.mxu2 }
  0xa3   : > { %379 = vst.msk [vmem:[%s575_s30 + $0x10] sm:$0xff] %vm376_vm2, %v362_v47  ;;  %v330_v50 = vpop.f32.mrf.mxu3  ;;  %v350_v51 = vmul.f32 %v561_v17, %v318_v49 }
  0xa4   : > { %383 = vst.msk [vmem:[%s575_s30 + $0x30] sm:$0xff] %vm376_vm2, %v366_v48  ;;  %v354_v52 = vmul.f32 %v561_v17, %v330_v50 }
  0xa5   : > { %v370_v53 = vadd.f32 %v566_v18, %v350_v51 }
  0xa6   : > { %v374_v54 = vadd.f32 %v566_v18, %v354_v52  ;;  %v297_v55 = vpop.f32.mrf.mxu0 }
  0xa7   : > { %v309_v56 = vpop.f32.mrf.mxu1  ;;  %v343_v57 = vmul.f32 %v561_v17, %v297_v55  ;;  %387 = vst.msk [vmem:[%s575_s30 + $0x50] sm:$0xff] %vm376_vm2, %v370_v53 }
  0xa8   : > { %v347_v58 = vmul.f32 %v561_v17, %v309_v56  ;;  %391 = vst.msk [vmem:[%s575_s30 + $0x70] sm:$0xff] %vm376_vm2, %v374_v54 }
  0xa9   : > { %v363_v59 = vadd.f32 %v566_v18, %v343_v57 }
  0xaa   : > { %v367_v60 = vadd.f32 %v566_v18, %v347_v58  ;;  %v321_v61 = vpop.f32.mrf.mxu2 }
  0xab   : > { %380 = vst.msk [vmem:[%s575_s30 + $0x18] sm:$0xff] %vm376_vm2, %v363_v59  ;;  %v333_v62 = vpop.f32.mrf.mxu3  ;;  %v351_v63 = vmul.f32 %v561_v17, %v321_v61 }
  0xac   : > { %384 = vst.msk [vmem:[%s575_s30 + $0x38] sm:$0xff] %vm376_vm2, %v367_v60  ;;  %v355_v0 = vmul.f32 %v561_v17, %v333_v62 }
  0xad   : > { %v371_v1 = vadd.f32 %v566_v18, %v351_v63 }
  0xae   : > { %v375_v2 = vadd.f32 %v566_v18, %v355_v0 }
  0xaf   : > { %388 = vst.msk [vmem:[%s575_s30 + $0x58] sm:$0xff] %vm376_vm2, %v371_v1 }
  0xb0   : > { %392 = vst.msk [vmem:[%s575_s30 + $0x78] sm:$0xff] %vm376_vm2, %v375_v2 }
  0xb1 PF: > { %s14_s15 = sadd.s32 1, %s496_s15  }
  0xb2   : > { %p11_p4 = scmp.ge.s32.totalorder %s14_s15, 6  }
  0xb4   :  { %13 = sbr.rel (!%p11_p4) target bundleno = 1 (0x1), region = 66 }

</bundles_post_ra>
